<compile_context>
chip_gen: v7x
topology: tpu7x:2x2x1
jax: 0.10.0
libtpu: 0.0.40
codegen_flags: <defaults>
</compile_context>

<pallas_src>
import numpy as np

import jax
import jax.numpy as jnp
from jax import lax
from jax.experimental import pallas as pl
from jax.experimental.pallas import tpu as pltpu

BN_EPS = 0.8   # nn.BatchNorm2d(out_filters, 0.8): second positional arg is eps
TOP = 8        # top zero-padding rows in the activation scratch (keeps stores 8-aligned)


# ----------------------------- fused Pallas kernel --------------------------

def _make_kernel(cfg):
    """cfg: tuple of (H, W, Cin, Cout, Ho, Wo) per conv block (static)."""
    n_layers = len(cfg)

    def kernel(x_ref, b0, b1, b2, b3, a0, a1, a2, a3, lw_ref, lb_ref, out_ref,
               s0, s1, s2, s3):
        bands = (b0, b1, b2, b3)
        affs = (a0, a1, a2, a3)
        scrs = (s0, s1, s2, s3)

        # Stage this sample's image into the row-padded scratch of layer 0.
        H0 = cfg[0][0]
        s0[...] = jnp.zeros(s0.shape, jnp.float32)
        s0[TOP:TOP + H0, :] = x_ref[0]                       # [H, W*C] channel-fastest

        y = None
        for li in range(n_layers):
            H, W, Cin, Cout, Ho, Wo = cfg[li]
            acc = jnp.zeros((Ho, Wo * Cout), jnp.float32)
            for kh in range(3):
                # rows for output row ho are input rows 2*ho + kh - 1
                # (scratch row = input row + TOP; row TOP-1 is the zero pad row).
                if Ho > 1:
                    idx = pl.ds(TOP - 1 + kh, Ho, stride=2)
                else:
                    idx = pl.ds(TOP - 1 + kh, 1)
                rows = scrs[li][idx, :]                      # [Ho, W*Cin]
                acc = acc + jnp.dot(rows, bands[li][kh],     # banded conv weights
                                    preferred_element_type=jnp.float32)
            aff = affs[li][...]                              # [3, Wo*Cout]
            y = acc + aff[0:1, :]                            # conv bias
            y = jnp.where(y >= 0.0, y, 0.2 * y)              # LeakyReLU(0.2)
            # Dropout2d(0.25): identity in eval mode.
            y = y * aff[1:2, :] + aff[2:3, :]                # BatchNorm(eval) folded affine

            if li + 1 < n_layers:
                nxt = scrs[li + 1]
                nxt[...] = jnp.zeros(nxt.shape, jnp.float32)
                nxt[TOP:TOP + Ho, :] = y                     # already next layer's layout
            else:
                # Linear + Sigmoid head (per-sample; no batch-quadratic matmul).
                z = y * lw_ref[...]                          # [ds, ds*Cf]
                logit = jnp.sum(z, axis=1, keepdims=True)    # [ds, 1]
                logit = jnp.sum(logit, axis=0, keepdims=True)  # [1, 1]
                logit = logit + lb_ref[...]
                val = 1.0 / (1.0 + jnp.exp(-logit))          # Sigmoid
                out_ref[...] = jnp.broadcast_to(val.reshape(1, 1, 1), (1, 1, 128))

    return kernel


# ----------------------------- builder (one-time packing) -------------------

def build_discriminator(blocks, lin_w, lin_b, *, batch, img_size):
    # Static per-layer metadata + banded weight / folded-affine packing (host, once).
    cfg, bands_np, affs_np = [], [], []
    H = W = img_size
    for p in blocks:
        w = np.asarray(p["w"], np.float32)                   # [Cout, Cin, 3, 3]
        cout, cin = int(w.shape[0]), int(w.shape[1])
        Ho, Wo = (H - 1) // 2 + 1, (W - 1) // 2 + 1
        # Banded weight: B[kh, w_in*Cin + ci, wo*Cout + co] = w[co, ci, kh, kw]
        # with w_in = 2*wo + kw - 1 (out-of-range taps = zero padding, omitted).
        B = np.zeros((3, W * cin, Wo * cout), np.float32)
        for kh in range(3):
            for wo in range(Wo):
                for kw in range(3):
                    w_in = 2 * wo + kw - 1
                    if 0 <= w_in < W:
                        B[kh, w_in * cin:(w_in + 1) * cin,
                          wo * cout:(wo + 1) * cout] = w[:, :, kh, kw].T
        aff = np.stack([np.tile(np.asarray(p["b"], np.float32), Wo),
                        np.tile(np.asarray(p["scale"], np.float32), Wo),
                        np.tile(np.asarray(p["shift"], np.float32), Wo)], axis=0)
        cfg.append((H, W, cin, cout, Ho, Wo))
        bands_np.append(B)
        affs_np.append(aff)
        H, W = Ho, Wo

    ds = cfg[-1][4]
    cf = cfg[-1][3]
    # Linear weight permuted from NCHW-flatten order (c,h,w) to (h-row, (w,c)-lane).
    lw = (np.asarray(lin_w, np.float32).reshape(cf, ds, ds)
          .transpose(1, 2, 0).reshape(ds, ds * cf))
    lb = np.asarray(lin_b, np.float32).reshape(1, 1)

    H0, W0, C0 = cfg[0][0], cfg[0][1], cfg[0][2]

    in_specs = [pl.BlockSpec((1, H0, W0 * C0), lambda n: (n, 0, 0))]
    for B in bands_np:
        in_specs.append(pl.BlockSpec(B.shape, lambda n: (0, 0, 0)))
    for A in affs_np:
        in_specs.append(pl.BlockSpec(A.shape, lambda n: (0, 0)))
    in_specs.append(pl.BlockSpec(lw.shape, lambda n: (0, 0)))
    in_specs.append(pl.BlockSpec(lb.shape, lambda n: (0, 0)))
    out_spec = pl.BlockSpec((1, 1, 128), lambda n: (n, 0, 0))  # lane-dense output block

    scratch_shapes = [pltpu.VMEM((TOP + h + 2, w * c), jnp.float32)
                      for (h, w, c, _co, _ho, _wo) in cfg]

    flops = 0
    for (h, w, cin, cout, ho, wo) in cfg:
        flops += 2 * 3 * ho * (w * cin) * (wo * cout)
    flops = flops * batch + 2 * batch * ds * ds * cf
    bytes_accessed = 4 * (batch * H0 * W0 * C0
                          + sum(B.size for B in bands_np)
                          + sum(A.size for A in affs_np)
                          + lw.size + lb.size + batch * 128)

    call = pl.pallas_call(
        _make_kernel(tuple(cfg)),
        out_shape=jax.ShapeDtypeStruct((batch, 1, 128), jnp.float32),
        grid=(batch,),
        in_specs=in_specs,
        out_specs=out_spec,
        scratch_shapes=scratch_shapes,
        compiler_params=pltpu.CompilerParams(
            dimension_semantics=("parallel",)),       # batch split across TCs on v7x
        cost_estimate=pl.CostEstimate(flops=int(flops), transcendentals=int(batch),
                                      bytes_accessed=int(bytes_accessed)),
    )

    band_args = [jnp.asarray(B) for B in bands_np]
    aff_args = [jnp.asarray(A) for A in affs_np]
    lw_j, lb_j = jnp.asarray(lw), jnp.asarray(lb)

    @jax.jit
    def forward(img_nchw):
        # Layout glue: NCHW -> [N, H, W*C] with channels fastest within a row.
        x = jnp.transpose(img_nchw, (0, 2, 3, 1)).astype(jnp.float32)
        x = x.reshape(batch, H0, W0 * C0)
        out = call(x, *band_args, *aff_args, lw_j, lb_j)
        return out[:, 0, :1]                                  # [batch, 1]

    return forward


# ----------------------------- synthetic parameters -------------------------

def init_params(key, channels, scale, img_size):
    """Deterministic synthetic parameters matching the PyTorch module shapes."""
    widths = [channels, 4 * scale, 8 * scale, 16 * scale, 32 * scale]
    blocks = []
    for i in range(4):
        cin, cout = widths[i], widths[i + 1]
        key, kw, kb, kg, kbt, km, kv = jax.random.split(key, 7)
        w = 0.05 * jax.random.normal(kw, (cout, cin, 3, 3), jnp.float32)
        b = 0.05 * jax.random.normal(kb, (cout,), jnp.float32)
        if i == 0:
            bn_scale = jnp.ones((cout,), jnp.float32)      # bn=False -> identity affine
            bn_shift = jnp.zeros((cout,), jnp.float32)
        else:
            gamma = 1.0 + 0.1 * jax.random.normal(kg, (cout,), jnp.float32)
            beta = 0.1 * jax.random.normal(kbt, (cout,), jnp.float32)
            rmean = 0.1 * jax.random.normal(km, (cout,), jnp.float32)
            rvar = jnp.abs(jax.random.normal(kv, (cout,), jnp.float32)) + 0.5
            inv = gamma / jnp.sqrt(rvar + BN_EPS)
            bn_scale = inv
            bn_shift = beta - rmean * inv
        blocks.append(dict(w=w, b=b, scale=bn_scale, shift=bn_shift))

    ds_size = img_size // (2 ** 4)
    lin_in = 32 * scale * ds_size ** 2
    key, kw, kb = jax.random.split(key, 3)
    lin_w = 0.05 * jax.random.normal(kw, (1, lin_in), jnp.float32)  # torch Linear [1, in]
    lin_b = 0.05 * jax.random.normal(kb, (1,), jnp.float32)
    return blocks, lin_w, lin_b


# ----------------------------- reference (pure JAX) -------------------------

def reference_forward(img_nchw, blocks, lin_w, lin_b):
    x = img_nchw.astype(jnp.float32)
    for p in blocks:
        x = lax.conv_general_dilated(
            x, p["w"], window_strides=(2, 2), padding=((1, 1), (1, 1)),
            dimension_numbers=("NCHW", "OIHW", "NCHW"))
        x = x + p["b"][None, :, None, None]
        x = jnp.where(x >= 0.0, x, 0.2 * x)
        x = x * p["scale"][None, :, None, None] + p["shift"][None, :, None, None]
    feat = x.reshape(x.shape[0], -1)
    return jax.nn.sigmoid(feat @ lin_w.T + lin_b)


# ----------------------------- main ------------------------------------------

if __name__ == "__main__":
    # opt: channels=3, img_size=16, discriminator_scale=2
    N, channels, img_size, scale = 2, 3, 16, 2

    key = jax.random.PRNGKey(0)
    key, kimg = jax.random.split(key)
    img = jax.random.normal(kimg, (N, channels, img_size, img_size), jnp.float32)

    blocks, lin_w, lin_b = init_params(key, channels, scale, img_size)

    forward = build_discriminator(blocks, lin_w, lin_b, batch=N, img_size=img_size)
    validity = jax.block_until_ready(forward(img))

    ref = jax.block_until_ready(reference_forward(img, blocks, lin_w, lin_b))

    assert validity.shape == (N, 1), validity.shape
    assert jnp.allclose(validity, ref, rtol=1e-4, atol=1e-4), (validity, ref)
    print("KERNEL_OK")
</pallas_src>

<mosaic_0001>
module attributes {stable_mosaic.version = 11 : i64} {
  func.func @kernel(%arg0: i32, %arg1: memref<1x16x48xf32, #tpu.memory_space<vmem>>, %arg2: memref<3x48x64xf32, #tpu.memory_space<vmem>>, %arg3: memref<3x64x64xf32, #tpu.memory_space<vmem>>, %arg4: memref<3x64x64xf32, #tpu.memory_space<vmem>>, %arg5: memref<3x64x64xf32, #tpu.memory_space<vmem>>, %arg6: memref<3x64xf32, #tpu.memory_space<vmem>>, %arg7: memref<3x64xf32, #tpu.memory_space<vmem>>, %arg8: memref<3x64xf32, #tpu.memory_space<vmem>>, %arg9: memref<3x64xf32, #tpu.memory_space<vmem>>, %arg10: memref<1x64xf32, #tpu.memory_space<vmem>>, %arg11: memref<1x1xf32, #tpu.memory_space<vmem>>, %arg12: memref<1x1x128xf32, #tpu.memory_space<vmem>>, %arg13: memref<26x48xf32, #tpu.memory_space<vmem>>, %arg14: memref<18x64xf32, #tpu.memory_space<vmem>>, %arg15: memref<14x64xf32, #tpu.memory_space<vmem>>, %arg16: memref<12x64xf32, #tpu.memory_space<vmem>>) attributes {dimension_semantics = [#tpu.dimension_semantics<parallel>], iteration_bounds = array<i64: 2>, scalar_prefetch = 0 : i64, scratch_operands = 4 : i64, tpu.core_type = #tpu.core_type<tc>, window_params = [{transform_indices = @transform_0, window_bounds = array<i64: 1, 16, 48>}, {pipeline_mode = #tpu.pipeline_mode<synchronous>, transform_indices = @transform_1, window_bounds = array<i64: 3, 48, 64>}, {pipeline_mode = #tpu.pipeline_mode<synchronous>, transform_indices = @transform_2, window_bounds = array<i64: 3, 64, 64>}, {pipeline_mode = #tpu.pipeline_mode<synchronous>, transform_indices = @transform_3, window_bounds = array<i64: 3, 64, 64>}, {pipeline_mode = #tpu.pipeline_mode<synchronous>, transform_indices = @transform_4, window_bounds = array<i64: 3, 64, 64>}, {pipeline_mode = #tpu.pipeline_mode<synchronous>, transform_indices = @transform_5, window_bounds = array<i64: 3, 64>}, {pipeline_mode = #tpu.pipeline_mode<synchronous>, transform_indices = @transform_6, window_bounds = array<i64: 3, 64>}, {pipeline_mode = #tpu.pipeline_mode<synchronous>, transform_indices = @transform_7, window_bounds = array<i64: 3, 64>}, {pipeline_mode = #tpu.pipeline_mode<synchronous>, transform_indices = @transform_8, window_bounds = array<i64: 3, 64>}, {pipeline_mode = #tpu.pipeline_mode<synchronous>, transform_indices = @transform_9, window_bounds = array<i64: 1, 64>}, {pipeline_mode = #tpu.pipeline_mode<synchronous>, transform_indices = @transform_10, window_bounds = array<i64: 1, 1>}, {transform_indices = @transform_11, window_bounds = array<i64: 1, 1, 128>}]} {
    %cst = arith.constant 0.000000e+00 : f32
    %0 = vector.broadcast %cst : f32 to vector<26x48xf32>
    %c0 = arith.constant 0 : index
    %c0_0 = arith.constant 0 : index
    %1 = vector.load %arg13[%c0, %c0_0] : memref<26x48xf32, #tpu.memory_space<vmem>>, vector<26x48xf32>
    tpu.vector_store %arg13[%c0, %c0_0], %0 {strides = array<i32>} : memref<26x48xf32, #tpu.memory_space<vmem>>, vector<26x48xf32>,
    %c0_1 = arith.constant 0 : index
    %c0_2 = arith.constant 0 : index
    %c0_3 = arith.constant 0 : index
    %2 = vector.load %arg1[%c0_1, %c0_2, %c0_3] : memref<1x16x48xf32, #tpu.memory_space<vmem>>, vector<1x16x48xf32>
    %3 = vector.shape_cast %2 : vector<1x16x48xf32> to vector<16x48xf32>
    %c8 = arith.constant 8 : index
    %c0_4 = arith.constant 0 : index
    %4 = vector.load %arg13[%c8, %c0_4] : memref<26x48xf32, #tpu.memory_space<vmem>>, vector<16x48xf32>
    tpu.vector_store %arg13[%c8, %c0_4], %3 {strides = array<i32>} : memref<26x48xf32, #tpu.memory_space<vmem>>, vector<16x48xf32>,
    %cst_5 = arith.constant 0.000000e+00 : f32
    %5 = vector.broadcast %cst_5 : f32 to vector<8x64xf32>
    %c7 = arith.constant 7 : index
    %c0_6 = arith.constant 0 : index
    %6 = tpu.strided_load %arg13[%c7, %c0_6] {strides = array<i32: 2, 1>} : memref<26x48xf32, #tpu.memory_space<vmem>>, vector<8x48xf32>
    %c0_7 = arith.constant 0 : index
    %c0_8 = arith.constant 0 : index
    %c0_9 = arith.constant 0 : index
    %7 = vector.load %arg2[%c0_7, %c0_8, %c0_9] : memref<3x48x64xf32, #tpu.memory_space<vmem>>, vector<1x48x64xf32>
    %8 = vector.shape_cast %7 : vector<1x48x64xf32> to vector<48x64xf32>
    %cst_10 = arith.constant dense<0.000000e+00> : vector<8x64xf32>
    %9 = tpu.matmul %6, %8, %cst_10 {dimension_numbers = #tpu.dot_dimension_numbers<[1], [0], [0], [1], [0, 0, 1, 1], [], []>} : vector<8x48xf32>, vector<48x64xf32>, vector<8x64xf32> -> vector<8x64xf32>
    %10 = arith.addf %5, %9 : vector<8x64xf32>
    %c8_11 = arith.constant 8 : index
    %c0_12 = arith.constant 0 : index
    %11 = tpu.strided_load %arg13[%c8_11, %c0_12] {strides = array<i32: 2, 1>} : memref<26x48xf32, #tpu.memory_space<vmem>>, vector<8x48xf32>
    %c1 = arith.constant 1 : index
    %c0_13 = arith.constant 0 : index
    %c0_14 = arith.constant 0 : index
    %12 = vector.load %arg2[%c1, %c0_13, %c0_14] : memref<3x48x64xf32, #tpu.memory_space<vmem>>, vector<1x48x64xf32>
    %13 = vector.shape_cast %12 : vector<1x48x64xf32> to vector<48x64xf32>
    %cst_15 = arith.constant dense<0.000000e+00> : vector<8x64xf32>
    %14 = tpu.matmul %11, %13, %cst_15 {dimension_numbers = #tpu.dot_dimension_numbers<[1], [0], [0], [1], [0, 0, 1, 1], [], []>} : vector<8x48xf32>, vector<48x64xf32>, vector<8x64xf32> -> vector<8x64xf32>
    %15 = arith.addf %10, %14 : vector<8x64xf32>
    %c9 = arith.constant 9 : index
    %c0_16 = arith.constant 0 : index
    %16 = tpu.strided_load %arg13[%c9, %c0_16] {strides = array<i32: 2, 1>} : memref<26x48xf32, #tpu.memory_space<vmem>>, vector<8x48xf32>
    %c2 = arith.constant 2 : index
    %c0_17 = arith.constant 0 : index
    %c0_18 = arith.constant 0 : index
    %17 = vector.load %arg2[%c2, %c0_17, %c0_18] : memref<3x48x64xf32, #tpu.memory_space<vmem>>, vector<1x48x64xf32>
    %18 = vector.shape_cast %17 : vector<1x48x64xf32> to vector<48x64xf32>
    %cst_19 = arith.constant dense<0.000000e+00> : vector<8x64xf32>
    %19 = tpu.matmul %16, %18, %cst_19 {dimension_numbers = #tpu.dot_dimension_numbers<[1], [0], [0], [1], [0, 0, 1, 1], [], []>} : vector<8x48xf32>, vector<48x64xf32>, vector<8x64xf32> -> vector<8x64xf32>
    %20 = arith.addf %15, %19 : vector<8x64xf32>
    %c0_20 = arith.constant 0 : index
    %c0_21 = arith.constant 0 : index
    %21 = vector.load %arg6[%c0_20, %c0_21] : memref<3x64xf32, #tpu.memory_space<vmem>>, vector<3x64xf32>
    %22 = vector.extract_strided_slice %21 {offsets = [0, 0], sizes = [1, 64], strides = [1, 1]} : vector<3x64xf32> to vector<1x64xf32>
    %23 = vector.broadcast %22 : vector<1x64xf32> to vector<8x64xf32>
    %24 = arith.addf %20, %23 : vector<8x64xf32>
    %cst_22 = arith.constant 0.000000e+00 : f32
    %25 = vector.broadcast %cst_22 : f32 to vector<8x64xf32>
    %26 = arith.cmpf oge, %24, %25 : vector<8x64xf32>
    %cst_23 = arith.constant 2.000000e-01 : f32
    %27 = vector.broadcast %cst_23 : f32 to vector<8x64xf32>
    %28 = arith.mulf %27, %24 : vector<8x64xf32>
    %29 = arith.select %26, %24, %28 : vector<8x64xi1>, vector<8x64xf32>
    %30 = vector.extract_strided_slice %21 {offsets = [1, 0], sizes = [1, 64], strides = [1, 1]} : vector<3x64xf32> to vector<1x64xf32>
    %31 = vector.broadcast %30 : vector<1x64xf32> to vector<8x64xf32>
    %32 = arith.mulf %29, %31 : vector<8x64xf32>
    %33 = vector.extract_strided_slice %21 {offsets = [2, 0], sizes = [1, 64], strides = [1, 1]} : vector<3x64xf32> to vector<1x64xf32>
    %34 = vector.broadcast %33 : vector<1x64xf32> to vector<8x64xf32>
    %35 = arith.addf %32, %34 : vector<8x64xf32>
    %cst_24 = arith.constant 0.000000e+00 : f32
    %36 = vector.broadcast %cst_24 : f32 to vector<18x64xf32>
    %c0_25 = arith.constant 0 : index
    %c0_26 = arith.constant 0 : index
    %37 = vector.load %arg14[%c0_25, %c0_26] : memref<18x64xf32, #tpu.memory_space<vmem>>, vector<18x64xf32>
    tpu.vector_store %arg14[%c0_25, %c0_26], %36 {strides = array<i32>} : memref<18x64xf32, #tpu.memory_space<vmem>>, vector<18x64xf32>,
    %c8_27 = arith.constant 8 : index
    %c0_28 = arith.constant 0 : index
    %38 = vector.load %arg14[%c8_27, %c0_28] : memref<18x64xf32, #tpu.memory_space<vmem>>, vector<8x64xf32>
    tpu.vector_store %arg14[%c8_27, %c0_28], %35 {strides = array<i32>} : memref<18x64xf32, #tpu.memory_space<vmem>>, vector<8x64xf32>,
    %cst_29 = arith.constant 0.000000e+00 : f32
    %39 = vector.broadcast %cst_29 : f32 to vector<4x64xf32>
    %c7_30 = arith.constant 7 : index
    %c0_31 = arith.constant 0 : index
    %40 = tpu.strided_load %arg14[%c7_30, %c0_31] {strides = array<i32: 2, 1>} : memref<18x64xf32, #tpu.memory_space<vmem>>, vector<4x64xf32>
    %c0_32 = arith.constant 0 : index
    %c0_33 = arith.constant 0 : index
    %c0_34 = arith.constant 0 : index
    %41 = vector.load %arg3[%c0_32, %c0_33, %c0_34] : memref<3x64x64xf32, #tpu.memory_space<vmem>>, vector<1x64x64xf32>
    %42 = vector.shape_cast %41 : vector<1x64x64xf32> to vector<64x64xf32>
    %cst_35 = arith.constant dense<0.000000e+00> : vector<4x64xf32>
    %43 = tpu.matmul %40, %42, %cst_35 {dimension_numbers = #tpu.dot_dimension_numbers<[1], [0], [0], [1], [0, 0, 1, 1], [], []>} : vector<4x64xf32>, vector<64x64xf32>, vector<4x64xf32> -> vector<4x64xf32>
    %44 = arith.addf %39, %43 : vector<4x64xf32>
    %c8_36 = arith.constant 8 : index
    %c0_37 = arith.constant 0 : index
    %45 = tpu.strided_load %arg14[%c8_36, %c0_37] {strides = array<i32: 2, 1>} : memref<18x64xf32, #tpu.memory_space<vmem>>, vector<4x64xf32>
    %c1_38 = arith.constant 1 : index
    %c0_39 = arith.constant 0 : index
    %c0_40 = arith.constant 0 : index
    %46 = vector.load %arg3[%c1_38, %c0_39, %c0_40] : memref<3x64x64xf32, #tpu.memory_space<vmem>>, vector<1x64x64xf32>
    %47 = vector.shape_cast %46 : vector<1x64x64xf32> to vector<64x64xf32>
    %cst_41 = arith.constant dense<0.000000e+00> : vector<4x64xf32>
    %48 = tpu.matmul %45, %47, %cst_41 {dimension_numbers = #tpu.dot_dimension_numbers<[1], [0], [0], [1], [0, 0, 1, 1], [], []>} : vector<4x64xf32>, vector<64x64xf32>, vector<4x64xf32> -> vector<4x64xf32>
    %49 = arith.addf %44, %48 : vector<4x64xf32>
    %c9_42 = arith.constant 9 : index
    %c0_43 = arith.constant 0 : index
    %50 = tpu.strided_load %arg14[%c9_42, %c0_43] {strides = array<i32: 2, 1>} : memref<18x64xf32, #tpu.memory_space<vmem>>, vector<4x64xf32>
    %c2_44 = arith.constant 2 : index
    %c0_45 = arith.constant 0 : index
    %c0_46 = arith.constant 0 : index
    %51 = vector.load %arg3[%c2_44, %c0_45, %c0_46] : memref<3x64x64xf32, #tpu.memory_space<vmem>>, vector<1x64x64xf32>
    %52 = vector.shape_cast %51 : vector<1x64x64xf32> to vector<64x64xf32>
    %cst_47 = arith.constant dense<0.000000e+00> : vector<4x64xf32>
    %53 = tpu.matmul %50, %52, %cst_47 {dimension_numbers = #tpu.dot_dimension_numbers<[1], [0], [0], [1], [0, 0, 1, 1], [], []>} : vector<4x64xf32>, vector<64x64xf32>, vector<4x64xf32> -> vector<4x64xf32>
    %54 = arith.addf %49, %53 : vector<4x64xf32>
    %c0_48 = arith.constant 0 : index
    %c0_49 = arith.constant 0 : index
    %55 = vector.load %arg7[%c0_48, %c0_49] : memref<3x64xf32, #tpu.memory_space<vmem>>, vector<3x64xf32>
    %56 = vector.extract_strided_slice %55 {offsets = [0, 0], sizes = [1, 64], strides = [1, 1]} : vector<3x64xf32> to vector<1x64xf32>
    %57 = vector.broadcast %56 : vector<1x64xf32> to vector<4x64xf32>
    %58 = arith.addf %54, %57 : vector<4x64xf32>
    %cst_50 = arith.constant 0.000000e+00 : f32
    %59 = vector.broadcast %cst_50 : f32 to vector<4x64xf32>
    %60 = arith.cmpf oge, %58, %59 : vector<4x64xf32>
    %cst_51 = arith.constant 2.000000e-01 : f32
    %61 = vector.broadcast %cst_51 : f32 to vector<4x64xf32>
    %62 = arith.mulf %61, %58 : vector<4x64xf32>
    %63 = arith.select %60, %58, %62 : vector<4x64xi1>, vector<4x64xf32>
    %64 = vector.extract_strided_slice %55 {offsets = [1, 0], sizes = [1, 64], strides = [1, 1]} : vector<3x64xf32> to vector<1x64xf32>
    %65 = vector.broadcast %64 : vector<1x64xf32> to vector<4x64xf32>
    %66 = arith.mulf %63, %65 : vector<4x64xf32>
    %67 = vector.extract_strided_slice %55 {offsets = [2, 0], sizes = [1, 64], strides = [1, 1]} : vector<3x64xf32> to vector<1x64xf32>
    %68 = vector.broadcast %67 : vector<1x64xf32> to vector<4x64xf32>
    %69 = arith.addf %66, %68 : vector<4x64xf32>
    %cst_52 = arith.constant 0.000000e+00 : f32
    %70 = vector.broadcast %cst_52 : f32 to vector<14x64xf32>
    %c0_53 = arith.constant 0 : index
    %c0_54 = arith.constant 0 : index
    %71 = vector.load %arg15[%c0_53, %c0_54] : memref<14x64xf32, #tpu.memory_space<vmem>>, vector<14x64xf32>
    tpu.vector_store %arg15[%c0_53, %c0_54], %70 {strides = array<i32>} : memref<14x64xf32, #tpu.memory_space<vmem>>, vector<14x64xf32>,
    %c8_55 = arith.constant 8 : index
    %c0_56 = arith.constant 0 : index
    %72 = vector.load %arg15[%c8_55, %c0_56] : memref<14x64xf32, #tpu.memory_space<vmem>>, vector<4x64xf32>
    tpu.vector_store %arg15[%c8_55, %c0_56], %69 {strides = array<i32>} : memref<14x64xf32, #tpu.memory_space<vmem>>, vector<4x64xf32>,
    %cst_57 = arith.constant 0.000000e+00 : f32
    %73 = vector.broadcast %cst_57 : f32 to vector<2x64xf32>
    %c7_58 = arith.constant 7 : index
    %c0_59 = arith.constant 0 : index
    %74 = tpu.strided_load %arg15[%c7_58, %c0_59] {strides = array<i32: 2, 1>} : memref<14x64xf32, #tpu.memory_space<vmem>>, vector<2x64xf32>
    %c0_60 = arith.constant 0 : index
    %c0_61 = arith.constant 0 : index
    %c0_62 = arith.constant 0 : index
    %75 = vector.load %arg4[%c0_60, %c0_61, %c0_62] : memref<3x64x64xf32, #tpu.memory_space<vmem>>, vector<1x64x64xf32>
    %76 = vector.shape_cast %75 : vector<1x64x64xf32> to vector<64x64xf32>
    %cst_63 = arith.constant dense<0.000000e+00> : vector<2x64xf32>
    %77 = tpu.matmul %74, %76, %cst_63 {dimension_numbers = #tpu.dot_dimension_numbers<[1], [0], [0], [1], [0, 0, 1, 1], [], []>} : vector<2x64xf32>, vector<64x64xf32>, vector<2x64xf32> -> vector<2x64xf32>
    %78 = arith.addf %73, %77 : vector<2x64xf32>
    %c8_64 = arith.constant 8 : index
    %c0_65 = arith.constant 0 : index
    %79 = tpu.strided_load %arg15[%c8_64, %c0_65] {strides = array<i32: 2, 1>} : memref<14x64xf32, #tpu.memory_space<vmem>>, vector<2x64xf32>
    %c1_66 = arith.constant 1 : index
    %c0_67 = arith.constant 0 : index
    %c0_68 = arith.constant 0 : index
    %80 = vector.load %arg4[%c1_66, %c0_67, %c0_68] : memref<3x64x64xf32, #tpu.memory_space<vmem>>, vector<1x64x64xf32>
    %81 = vector.shape_cast %80 : vector<1x64x64xf32> to vector<64x64xf32>
    %cst_69 = arith.constant dense<0.000000e+00> : vector<2x64xf32>
    %82 = tpu.matmul %79, %81, %cst_69 {dimension_numbers = #tpu.dot_dimension_numbers<[1], [0], [0], [1], [0, 0, 1, 1], [], []>} : vector<2x64xf32>, vector<64x64xf32>, vector<2x64xf32> -> vector<2x64xf32>
    %83 = arith.addf %78, %82 : vector<2x64xf32>
    %c9_70 = arith.constant 9 : index
    %c0_71 = arith.constant 0 : index
    %84 = tpu.strided_load %arg15[%c9_70, %c0_71] {strides = array<i32: 2, 1>} : memref<14x64xf32, #tpu.memory_space<vmem>>, vector<2x64xf32>
    %c2_72 = arith.constant 2 : index
    %c0_73 = arith.constant 0 : index
    %c0_74 = arith.constant 0 : index
    %85 = vector.load %arg4[%c2_72, %c0_73, %c0_74] : memref<3x64x64xf32, #tpu.memory_space<vmem>>, vector<1x64x64xf32>
    %86 = vector.shape_cast %85 : vector<1x64x64xf32> to vector<64x64xf32>
    %cst_75 = arith.constant dense<0.000000e+00> : vector<2x64xf32>
    %87 = tpu.matmul %84, %86, %cst_75 {dimension_numbers = #tpu.dot_dimension_numbers<[1], [0], [0], [1], [0, 0, 1, 1], [], []>} : vector<2x64xf32>, vector<64x64xf32>, vector<2x64xf32> -> vector<2x64xf32>
    %88 = arith.addf %83, %87 : vector<2x64xf32>
    %c0_76 = arith.constant 0 : index
    %c0_77 = arith.constant 0 : index
    %89 = vector.load %arg8[%c0_76, %c0_77] : memref<3x64xf32, #tpu.memory_space<vmem>>, vector<3x64xf32>
    %90 = vector.extract_strided_slice %89 {offsets = [0, 0], sizes = [1, 64], strides = [1, 1]} : vector<3x64xf32> to vector<1x64xf32>
    %91 = vector.broadcast %90 : vector<1x64xf32> to vector<2x64xf32>
    %92 = arith.addf %88, %91 : vector<2x64xf32>
    %cst_78 = arith.constant 0.000000e+00 : f32
    %93 = vector.broadcast %cst_78 : f32 to vector<2x64xf32>
    %94 = arith.cmpf oge, %92, %93 : vector<2x64xf32>
    %cst_79 = arith.constant 2.000000e-01 : f32
    %95 = vector.broadcast %cst_79 : f32 to vector<2x64xf32>
    %96 = arith.mulf %95, %92 : vector<2x64xf32>
    %97 = arith.select %94, %92, %96 : vector<2x64xi1>, vector<2x64xf32>
    %98 = vector.extract_strided_slice %89 {offsets = [1, 0], sizes = [1, 64], strides = [1, 1]} : vector<3x64xf32> to vector<1x64xf32>
    %99 = vector.broadcast %98 : vector<1x64xf32> to vector<2x64xf32>
    %100 = arith.mulf %97, %99 : vector<2x64xf32>
    %101 = vector.extract_strided_slice %89 {offsets = [2, 0], sizes = [1, 64], strides = [1, 1]} : vector<3x64xf32> to vector<1x64xf32>
    %102 = vector.broadcast %101 : vector<1x64xf32> to vector<2x64xf32>
    %103 = arith.addf %100, %102 : vector<2x64xf32>
    %cst_80 = arith.constant 0.000000e+00 : f32
    %104 = vector.broadcast %cst_80 : f32 to vector<12x64xf32>
    %c0_81 = arith.constant 0 : index
    %c0_82 = arith.constant 0 : index
    %105 = vector.load %arg16[%c0_81, %c0_82] : memref<12x64xf32, #tpu.memory_space<vmem>>, vector<12x64xf32>
    tpu.vector_store %arg16[%c0_81, %c0_82], %104 {strides = array<i32>} : memref<12x64xf32, #tpu.memory_space<vmem>>, vector<12x64xf32>,
    %c8_83 = arith.constant 8 : index
    %c0_84 = arith.constant 0 : index
    %106 = vector.load %arg16[%c8_83, %c0_84] : memref<12x64xf32, #tpu.memory_space<vmem>>, vector<2x64xf32>
    tpu.vector_store %arg16[%c8_83, %c0_84], %103 {strides = array<i32>} : memref<12x64xf32, #tpu.memory_space<vmem>>, vector<2x64xf32>,
    %cst_85 = arith.constant 0.000000e+00 : f32
    %107 = vector.broadcast %cst_85 : f32 to vector<1x64xf32>
    %c7_86 = arith.constant 7 : index
    %c0_87 = arith.constant 0 : index
    %108 = vector.load %arg16[%c7_86, %c0_87] : memref<12x64xf32, #tpu.memory_space<vmem>>, vector<1x64xf32>
    %c0_88 = arith.constant 0 : index
    %c0_89 = arith.constant 0 : index
    %c0_90 = arith.constant 0 : index
    %109 = vector.load %arg5[%c0_88, %c0_89, %c0_90] : memref<3x64x64xf32, #tpu.memory_space<vmem>>, vector<1x64x64xf32>
    %110 = vector.shape_cast %109 : vector<1x64x64xf32> to vector<64x64xf32>
    %cst_91 = arith.constant dense<0.000000e+00> : vector<1x64xf32>
    %111 = tpu.matmul %108, %110, %cst_91 {dimension_numbers = #tpu.dot_dimension_numbers<[1], [0], [0], [1], [0, 0, 1, 1], [], []>} : vector<1x64xf32>, vector<64x64xf32>, vector<1x64xf32> -> vector<1x64xf32>
    %112 = arith.addf %107, %111 : vector<1x64xf32>
    %c8_92 = arith.constant 8 : index
    %c0_93 = arith.constant 0 : index
    %113 = vector.load %arg16[%c8_92, %c0_93] : memref<12x64xf32, #tpu.memory_space<vmem>>, vector<1x64xf32>
    %c1_94 = arith.constant 1 : index
    %c0_95 = arith.constant 0 : index
    %c0_96 = arith.constant 0 : index
    %114 = vector.load %arg5[%c1_94, %c0_95, %c0_96] : memref<3x64x64xf32, #tpu.memory_space<vmem>>, vector<1x64x64xf32>
    %115 = vector.shape_cast %114 : vector<1x64x64xf32> to vector<64x64xf32>
    %cst_97 = arith.constant dense<0.000000e+00> : vector<1x64xf32>
    %116 = tpu.matmul %113, %115, %cst_97 {dimension_numbers = #tpu.dot_dimension_numbers<[1], [0], [0], [1], [0, 0, 1, 1], [], []>} : vector<1x64xf32>, vector<64x64xf32>, vector<1x64xf32> -> vector<1x64xf32>
    %117 = arith.addf %112, %116 : vector<1x64xf32>
    %c9_98 = arith.constant 9 : index
    %c0_99 = arith.constant 0 : index
    %118 = vector.load %arg16[%c9_98, %c0_99] : memref<12x64xf32, #tpu.memory_space<vmem>>, vector<1x64xf32>
    %c2_100 = arith.constant 2 : index
    %c0_101 = arith.constant 0 : index
    %c0_102 = arith.constant 0 : index
    %119 = vector.load %arg5[%c2_100, %c0_101, %c0_102] : memref<3x64x64xf32, #tpu.memory_space<vmem>>, vector<1x64x64xf32>
    %120 = vector.shape_cast %119 : vector<1x64x64xf32> to vector<64x64xf32>
    %cst_103 = arith.constant dense<0.000000e+00> : vector<1x64xf32>
    %121 = tpu.matmul %118, %120, %cst_103 {dimension_numbers = #tpu.dot_dimension_numbers<[1], [0], [0], [1], [0, 0, 1, 1], [], []>} : vector<1x64xf32>, vector<64x64xf32>, vector<1x64xf32> -> vector<1x64xf32>
    %122 = arith.addf %117, %121 : vector<1x64xf32>
    %c0_104 = arith.constant 0 : index
    %c0_105 = arith.constant 0 : index
    %123 = vector.load %arg9[%c0_104, %c0_105] : memref<3x64xf32, #tpu.memory_space<vmem>>, vector<3x64xf32>
    %124 = vector.extract_strided_slice %123 {offsets = [0, 0], sizes = [1, 64], strides = [1, 1]} : vector<3x64xf32> to vector<1x64xf32>
    %125 = arith.addf %122, %124 : vector<1x64xf32>
    %cst_106 = arith.constant 0.000000e+00 : f32
    %126 = vector.broadcast %cst_106 : f32 to vector<1x64xf32>
    %127 = arith.cmpf oge, %125, %126 : vector<1x64xf32>
    %cst_107 = arith.constant 2.000000e-01 : f32
    %128 = vector.broadcast %cst_107 : f32 to vector<1x64xf32>
    %129 = arith.mulf %128, %125 : vector<1x64xf32>
    %130 = arith.select %127, %125, %129 : vector<1x64xi1>, vector<1x64xf32>
    %131 = vector.extract_strided_slice %123 {offsets = [1, 0], sizes = [1, 64], strides = [1, 1]} : vector<3x64xf32> to vector<1x64xf32>
    %132 = arith.mulf %130, %131 : vector<1x64xf32>
    %133 = vector.extract_strided_slice %123 {offsets = [2, 0], sizes = [1, 64], strides = [1, 1]} : vector<3x64xf32> to vector<1x64xf32>
    %134 = arith.addf %132, %133 : vector<1x64xf32>
    %c0_108 = arith.constant 0 : index
    %c0_109 = arith.constant 0 : index
    %135 = vector.load %arg10[%c0_108, %c0_109] : memref<1x64xf32, #tpu.memory_space<vmem>>, vector<1x64xf32>
    %136 = arith.mulf %134, %135 : vector<1x64xf32>
    %cst_110 = arith.constant dense<0.000000e+00> : vector<1xf32>
    %137 = vector.multi_reduction <add>, %136, %cst_110 [1] : vector<1x64xf32> to vector<1xf32>
    %138 = vector.shape_cast %137 : vector<1xf32> to vector<1x1xf32>
    %cst_111 = arith.constant dense<0.000000e+00> : vector<1xf32>
    %139 = vector.multi_reduction <add>, %138, %cst_111 [0] : vector<1x1xf32> to vector<1xf32>
    %140 = vector.shape_cast %139 : vector<1xf32> to vector<1x1xf32>
    %c0_112 = arith.constant 0 : index
    %c0_113 = arith.constant 0 : index
    %141 = vector.load %arg11[%c0_112, %c0_113] : memref<1x1xf32, #tpu.memory_space<vmem>>, vector<1x1xf32>
    %142 = arith.addf %140, %141 : vector<1x1xf32>
    %cst_114 = arith.constant 0.000000e+00 : f32
    %143 = vector.broadcast %cst_114 : f32 to vector<1x1xf32>
    %144 = arith.subf %143, %142 : vector<1x1xf32>
    %145 = math.exp %144 : vector<1x1xf32>
    %cst_115 = arith.constant 1.000000e+00 : f32
    %146 = vector.broadcast %cst_115 : f32 to vector<1x1xf32>
    %147 = arith.addf %146, %145 : vector<1x1xf32>
    %cst_116 = arith.constant 1.000000e+00 : f32
    %148 = vector.broadcast %cst_116 : f32 to vector<1x1xf32>
    %149 = arith.divf %148, %147 : vector<1x1xf32>
    %150 = vector.shape_cast %149 : vector<1x1xf32> to vector<1x1x1xf32>
    %151 = vector.shape_cast %150 : vector<1x1x1xf32> to vector<1x1x1xf32>
    %152 = vector.broadcast %151 : vector<1x1x1xf32> to vector<1x1x128xf32>
    %c0_117 = arith.constant 0 : index
    %c0_118 = arith.constant 0 : index
    %c0_119 = arith.constant 0 : index
    %153 = vector.load %arg12[%c0_117, %c0_118, %c0_119] : memref<1x1x128xf32, #tpu.memory_space<vmem>>, vector<1x1x128xf32>
    tpu.vector_store %arg12[%c0_117, %c0_118, %c0_119], %152 {strides = array<i32>} : memref<1x1x128xf32, #tpu.memory_space<vmem>>, vector<1x1x128xf32>,
    return
  }
  func.func @transform_0(%arg0: i32) -> (i32, i32, i32) {
    %c0_i32 = arith.constant 0 : i32
    %c0_i32_0 = arith.constant 0 : i32
    %c0_i32_1 = arith.constant 0 : i32
    return %arg0, %c0_i32, %c0_i32_0 : i32, i32, i32
  }
  func.func @transform_1(%arg0: i32) -> (i32, i32, i32) {
    %c0_i32 = arith.constant 0 : i32
    %c0_i32_0 = arith.constant 0 : i32
    %c0_i32_1 = arith.constant 0 : i32
    %c0_i32_2 = arith.constant 0 : i32
    return %c0_i32, %c0_i32_0, %c0_i32_1 : i32, i32, i32
  }
  func.func @transform_2(%arg0: i32) -> (i32, i32, i32) {
    %c0_i32 = arith.constant 0 : i32
    %c0_i32_0 = arith.constant 0 : i32
    %c0_i32_1 = arith.constant 0 : i32
    %c0_i32_2 = arith.constant 0 : i32
    return %c0_i32, %c0_i32_0, %c0_i32_1 : i32, i32, i32
  }
  func.func @transform_3(%arg0: i32) -> (i32, i32, i32) {
    %c0_i32 = arith.constant 0 : i32
    %c0_i32_0 = arith.constant 0 : i32
    %c0_i32_1 = arith.constant 0 : i32
    %c0_i32_2 = arith.constant 0 : i32
    return %c0_i32, %c0_i32_0, %c0_i32_1 : i32, i32, i32
  }
  func.func @transform_4(%arg0: i32) -> (i32, i32, i32) {
    %c0_i32 = arith.constant 0 : i32
    %c0_i32_0 = arith.constant 0 : i32
    %c0_i32_1 = arith.constant 0 : i32
    %c0_i32_2 = arith.constant 0 : i32
    return %c0_i32, %c0_i32_0, %c0_i32_1 : i32, i32, i32
  }
  func.func @transform_5(%arg0: i32) -> (i32, i32) {
    %c0_i32 = arith.constant 0 : i32
    %c0_i32_0 = arith.constant 0 : i32
    %c0_i32_1 = arith.constant 0 : i32
    return %c0_i32, %c0_i32_0 : i32, i32
  }
  func.func @transform_6(%arg0: i32) -> (i32, i32) {
    %c0_i32 = arith.constant 0 : i32
    %c0_i32_0 = arith.constant 0 : i32
    %c0_i32_1 = arith.constant 0 : i32
    return %c0_i32, %c0_i32_0 : i32, i32
  }
  func.func @transform_7(%arg0: i32) -> (i32, i32) {
    %c0_i32 = arith.constant 0 : i32
    %c0_i32_0 = arith.constant 0 : i32
    %c0_i32_1 = arith.constant 0 : i32
    return %c0_i32, %c0_i32_0 : i32, i32
  }
  func.func @transform_8(%arg0: i32) -> (i32, i32) {
    %c0_i32 = arith.constant 0 : i32
    %c0_i32_0 = arith.constant 0 : i32
    %c0_i32_1 = arith.constant 0 : i32
    return %c0_i32, %c0_i32_0 : i32, i32
  }
  func.func @transform_9(%arg0: i32) -> (i32, i32) {
    %c0_i32 = arith.constant 0 : i32
    %c0_i32_0 = arith.constant 0 : i32
    %c0_i32_1 = arith.constant 0 : i32
    return %c0_i32, %c0_i32_0 : i32, i32
  }
  func.func @transform_10(%arg0: i32) -> (i32, i32) {
    %c0_i32 = arith.constant 0 : i32
    %c0_i32_0 = arith.constant 0 : i32
    %c0_i32_1 = arith.constant 0 : i32
    return %c0_i32, %c0_i32_0 : i32, i32
  }
  func.func @transform_11(%arg0: i32) -> (i32, i32, i32) {
    %c0_i32 = arith.constant 0 : i32
    %c0_i32_0 = arith.constant 0 : i32
    %c0_i32_1 = arith.constant 0 : i32
    return %arg0, %c0_i32, %c0_i32_0 : i32, i32, i32
  }
}

</mosaic_0001>

<bundles_post_ra>
// kernel: forward.1
= control target key start
LH: loop header
LB: loop body
LE: loop exit
PB: predicated region body
PF: predicated region fallthrough
CT: control target
= control target key end

     0   :  { %s2727_s0 = inlined_call_operand.vmem [shape: f32[2,16,48], index: 0, kind: input, shape index: {}]   ;;  %s2728_s1 = inlined_call_operand.vmem [shape: f32[3,48,64], index: 1, kind: input, shape index: {}]   ;;  %s2729_s2 = inlined_call_operand.hbm [shape: f32[3,64,64], index: 2, kind: input, shape index: {}]   ;;  %s2730_s3 = inlined_call_operand.hbm [shape: f32[3,64,64], index: 3, kind: input, shape index: {}]   ;;  %s2731_s4 = inlined_call_operand.vmem [shape: f32[3,64,64], index: 4, kind: input, shape index: {}]   ;;  %s2732_s5 = inlined_call_operand.hbm [shape: f32[3,64], index: 5, kind: input, shape index: {}]   ;;  %s2733_s6 = inlined_call_operand.vmem [shape: f32[3,64], index: 6, kind: input, shape index: {}]   ;;  %s2734_s7 = inlined_call_operand.vmem [shape: f32[3,64], index: 7, kind: input, shape index: {}]   ;;  %s2735_s8 = inlined_call_operand.vmem [shape: f32[3,64], index: 8, kind: input, shape index: {}]   ;;  %s2736_s9 = inlined_call_operand.vmem [shape: f32[1,64], index: 9, kind: input, shape index: {}]   ;;  %s2737_s10 = inlined_call_operand.<no memory space> [shape: f32[1,1], index: 10, kind: input, shape index: {}]   ;;  %s2738_s11 = inlined_call_operand.vmem [shape: f32[2,1,128], index: 11, kind: output, shape index: {}]  }
   0x1   :  { %v16_v0 = vstv %s2737_s10 }
   0x2   :  { %17 = vst [vmem:[#allocation6] sm:$0x1] %v16_v0 }
   0x3   :  { %18 = vsyncpa [#allocation8], 0 }
   0x4   :  { %19 = vsyncpa [#allocation10], 0  ;;  %s2349_s19 = smov 0  }
   0x5 LB: > { %s2355_s20 = sadd.s32 4294967295, %s2275_s19   ;;  %p1620_p0 = scmp.ge.s32.totalorder %s2275_s19, 1  ;;  %s2275_s19 = sphi %s2349_s19, %s25_s19  }
   0x6   : > { %p292_p1 = scmp.lt.s32.totalorder %s2275_s19, 3  ;;  %p2739_p2 = scmp.eq.s32.totalorder %s2355_s20, 0 }
   0x7   : > { %s2277_s21 = smov [#allocation9]   ;;  %s2278_s23 = smov [#allocation7]  }
   0x8   : > { %p2360_p3 = pnand %p1620_p0, %p292_p1  ;;  %s320_s22 = sshll.u32 %s2277_s21, 4  ;;  %s321_s22 = int_to_ptr.vmem [resolvable:$true] %s320_s22 }
   0x9   : > { %s307_s24 = sshll.u32 %s2278_s23, 4  ;;  %s2279_s26 = smov [#allocation11]   ;;  %s2372_s24 = int_to_ptr.vmem [resolvable:$true] %s307_s24 }
   0xa   : > { %s2741_s10 = scalar_select %p2360_p3, 1, 0 }
   0xb   : > { %p2139_p4 = pneg %p2360_p3  ;;  %s337_s27 = sshll.u32 %s2279_s26, 4  ;;  %s2374_s27 = int_to_ptr.vmem [resolvable:$true] %s337_s27 }
   0xc   : > { %s2177_s30 = scalar_lea.hbm %s2730_s3, 3072 }
   0xd   : > { %p2368_p5 = pnand %p2739_p2, %p2139_p4  ;;  %p2178_p6 = scmp.ne.s32.totalorder %s2730_s3, %s2177_s30 }
   0xe   : > { %p2184_p10 = scmp.lt.u32.totalorder %s2177_s30, %s2730_s3 }
   0xf   : > { %p2384_p7 = pneg %p2368_p5 }
  0x11   : > { %p2180_p8 = pnand %p2384_p7, %p2178_p6 }
  0x13   : > { %p2181_p9 = pneg %p2180_p8 }
  0x15   : > { %p2186_p11 = pnand %p2184_p10, %p2181_p9 }
  0x17   : > { %2189 = shalt.err (!%p2186_p11)
}
  0x18   : > { %s2190_s17 = scalar_lea.vmem %s321_s22, 3072  ;;  %p2198_p1 = scmp.lt.s32.totalorder %s321_s22, %s321_s22 }
  0x19   : > { %p2191_p12 = scmp.ne.s32.totalorder %s321_s22, %s2190_s17  ;;  %p2199_p4 = scmp.lt.s32.totalorder %s2190_s17, %s2190_s17 }
  0x1b   : > { %p2193_p13 = pnand %p2191_p12, %p2384_p7  ;;  %p2200_p2 = por %p2199_p4, %p2198_p1 }
  0x1d   : > { %p2194_p0 = pneg %p2193_p13 }
  0x1f   : > { %p2201_p3 = pnand %p2200_p2, %p2194_p0 }
  0x21   : > { %2204 = shalt.err (!%p2201_p3)
}
  0x22   : > { %s2280_s18 = smov 128   ;;  %s2281_s21 = smov 8  }
  0x23   : > { %2145 = dma.hbm_to_vmem [thread:$0]  (!%p2368_p5), %s2730_s3, 3072, %s321_s22, [#allocation10], %s2280_s18, %s2280_s18, %s2281_s21  }
  0x24   : > { %s2205_s30 = scalar_lea.hbm %s2729_s2, 3072 }
  0x25   : > { %p2206_p6 = scmp.ne.s32.totalorder %s2729_s2, %s2205_s30  ;;  %p2212_p8 = scmp.lt.u32.totalorder %s2205_s30, %s2729_s2 }
  0x27   : > { %p2208_p2 = pnand %p2206_p6, %p2384_p7 }
  0x29   : > { %p2209_p3 = pneg %p2208_p2 }
  0x2b   : > { %p2214_p9 = pnand %p2212_p8, %p2209_p3 }
  0x2d   : > { %2217 = shalt.err (!%p2214_p9)
}
  0x2e   : > { %s2218_s22 = scalar_lea.vmem %s2372_s24, 3072  ;;  %p2226_p13 = scmp.lt.s32.totalorder %s2372_s24, %s2372_s24 }
  0x2f   : > { %p2219_p10 = scmp.ne.s32.totalorder %s2372_s24, %s2218_s22  ;;  %p2227_p0 = scmp.lt.s32.totalorder %s2218_s22, %s2218_s22 }
  0x31   : > { %p2221_p11 = pnand %p2219_p10, %p2384_p7  ;;  %p2228_p1 = por %p2227_p0, %p2226_p13 }
  0x33   : > { %p2222_p12 = pneg %p2221_p11 }
  0x35   : > { %p2229_p4 = pnand %p2228_p1, %p2222_p12 }
  0x37   : > { %2232 = shalt.err (!%p2229_p4)
}
  0x38   : > { %2142 = dma.hbm_to_vmem [thread:$0]  (!%p2368_p5), %s2729_s2, 3072, %s2372_s24, [#allocation8], %s2280_s18, %s2280_s18, %s2281_s21  }
  0x39   : > { %s2233_s29 = scalar_lea.hbm %s2732_s5, 64 }
  0x3a   : > { %p2234_p6 = scmp.ne.s32.totalorder %s2732_s5, %s2233_s29  ;;  %p2240_p8 = scmp.lt.u32.totalorder %s2233_s29, %s2732_s5 }
  0x3c   : > { %p2236_p2 = pnand %p2234_p6, %p2384_p7 }
  0x3e   : > { %p2237_p3 = pneg %p2236_p2 }
  0x40   : > { %p2242_p9 = pnand %p2240_p8, %p2237_p3 }
  0x42   : > { %2245 = shalt.err (!%p2242_p9)
}
  0x43   : > { %s2246_s24 = scalar_lea.vmem %s2374_s27, 64  ;;  %p2254_p13 = scmp.lt.s32.totalorder %s2374_s27, %s2374_s27 }
  0x44   : > { %p2247_p10 = scmp.ne.s32.totalorder %s2374_s27, %s2246_s24  ;;  %p2255_p0 = scmp.lt.s32.totalorder %s2246_s24, %s2246_s24 }
  0x46   : > { %p2249_p11 = pnand %p2247_p10, %p2384_p7  ;;  %p2256_p1 = por %p2255_p0, %p2254_p13 }
  0x48   : > { %p2250_p12 = pneg %p2249_p11 }
  0x4a   : > { %p2257_p4 = pnand %p2256_p1, %p2250_p12 }
  0x4c   : > { %2260 = shalt.err (!%p2257_p4)
}
  0x4d   : > { %2148 = dma.hbm_to_vmem [thread:$0]  (!%p2368_p5), %s2732_s5, 64, %s2374_s27, [#allocation10]  }
  0x4e   : > { %p2744_p6 = scmp.ne.s32.totalorder %s2741_s10, 0 }
  0x4f   : > { %p2745_p2 = scmp.eq.s32.totalorder (!%p2744_p6), %s2355_s20, 0 }
  0x50   : > { %373 = sbr.rel (%p2744_p6) target bundleno = 1386 (0x56a), region = 64 }
  0x57   : > { %2266 = dma.done.wait (%p2745_p2), [#allocation8], 3072   ;;  %p2746_p7 = pmov %p2745_p2 }
  0x58   : > { %p2747_p3 = pmov %p2745_p2 }
  0x59   : > { %2268 = vsyncadd (%p2746_p7), [#allocation8], 4294964224 }
  0x5a   : > { %2270 = dma.done.wait (%p2747_p3), [#allocation10], 3136   ;;  %p2748_p8 = pmov %p2745_p2 }
  0x5b   : > { %v2282_v1 = vmov 0.0|0.0   ;;  %p419_p5 = scmp.lt.s32.totalorder %s2355_s20, 1  ;;  %vm427_vm0 = vcmask 392192   ;;  %vm2283_vm1 = vmmov 0   ;;  %v2284_v2 = vmov 0.0   ;;  %v1631_v3 = vld [vmem:[%s2728_s1 + $0x30] sm:$0xff] }
  0x5c   : > { %2272 = vsyncadd (%p2748_p8), [#allocation10], 4294964160  ;;  %1992 = vmatprep.subr.bf16.mxu0 %v2282_v1  ;;  %2001 = vmatprep.subr.bf16.mxu1 %v2282_v1  ;;  %428 = vst.msk [vmem:[#allocation2] sm:$0xff] %vm427_vm0, %v2284_v2  ;;  %v1632_v4 = vld [vmem:[%s2728_s1 + $0x38] sm:$0xff]  ;;  %v439_v5 = vld [vmem:[%s2728_s1] sm:$0xff]  ;;  %vm702_vm2 = vcmask 523264   ;;  %v684_v59 = vlaneseq }
  0x5d   : > { %1788 = vmatprep.mubr.msk.f32.mxu0 %vm2283_vm1, %v2284_v2  ;;  %429 = vst.msk [vmem:[#allocation2 + $0x8] sm:$0xff] %vm427_vm0, %v2284_v2  ;;  %430 = vst.msk [vmem:[#allocation2 + $0x10] sm:$0xff] %vm427_vm0, %v2284_v2  ;;  %1803 = vmatprep.mubr.msk.f32.mxu1 %vm2283_vm1, %v2284_v2  ;;  %s2750_s20 = smov (!%p419_p5, %s2355_s20), 1  ;;  %v1993_v6 = vpack.c.bf16 %v1632_v4, %v1631_v3  ;;  %v440_v7 = vld [vmem:[%s2728_s1 + $0x8] sm:$0xff]  ;;  %v1633_v8 = vld [vmem:[%s2728_s1 + $0x40] sm:$0xff]  ;;  %vm980_vm4 = vcmask 521216  }
  0x5e   : > { %s1673_s10 = sshll.u32 %s2750_s20, 4  ;;  %v1634_v9 = vld [vmem:[%s2728_s1 + $0x48] sm:$0xff]  ;;  %v2002_v10 = vpack.c.bf16 %v440_v7, %v439_v5  ;;  %v441_v11 = vld [vmem:[%s2728_s1 + $0x10] sm:$0xff]  ;;  %v442_v12 = vld [vmem:[%s2728_s1 + $0x18] sm:$0xff]  ;;  %704 = vst.msk [vmem:[#allocation3 + $0x8] sm:$0xff] %vm702_vm2, %v2284_v2  ;;  %v685_v3 = vshrl.u32 %v684_v59, 7  ;;  %s426_s26 = scalar_lea.vmem %s2738_s11, %s2750_s20 }
  0x5f   : > { %s423_s24 = scalar_lea.vmem %s2727_s0, %s1673_s10  ;;  %1994 = vmatpush3.bf16.msra.mxu0 %v1993_v6  ;;  %v1996_v13 = vpack.c.bf16 %v1634_v9, %v1633_v8  ;;  %v1635_v14 = vld [vmem:[%s2728_s1 + $0x50] sm:$0xff]  ;;  %v2005_v15 = vpack.c.bf16 %v442_v12, %v441_v11  ;;  %v1636_v16 = vld [vmem:[%s2728_s1 + $0x58] sm:$0xff]  ;;  %v443_v19 = vld [vmem:[%s2728_s1 + $0x20] sm:$0xff]  ;;  %703 = vst.msk [vmem:[#allocation3] sm:$0xff] %vm702_vm2, %v2284_v2  ;;  %vm982_vm5 = vcmask 519168   ;;  %vm705_vm7 = vcmask 517120  }
  0x60   : > { %2003 = vmatpush3.bf16.msra.mxu1 %v2002_v10  ;;  %1995 = vmatprep.subr.bf16.mxu0 %v2282_v1  ;;  %v433_v17 = vld [vmem:[%s423_s24] sm:$0xff]  ;;  %v434_v18 = vld [vmem:[%s423_s24 + $0x8] sm:$0xff]  ;;  %v1999_v21 = vpack.c.bf16 %v1636_v16, %v1635_v14  ;;  %v1641_v26 = vld [vmem:[%s2728_s1 + $0x70] sm:$0xff]  ;;  %979 = vst.msk [vmem:[#allocation4] sm:$0xff] %vm702_vm2, %v2284_v2  ;;  %v2566_v4 = vsub.s32 0, %v685_v3  ;;  %v2569_v8 = vsub.s32 1, %v685_v3 }
  0x61   : > { %2004 = vmatprep.subr.bf16.mxu1 %v2282_v1  ;;  %v444_v20 = vld [vmem:[%s2728_s1 + $0x28] sm:$0xff]  ;;  %435 = vst.msk [vmem:[#allocation2 + $0x8] sm:$0xff] %vm427_vm0, %v433_v17  ;;  %436 = vst.msk [vmem:[#allocation2 + $0x10] sm:$0xff] %vm427_vm0, %v434_v18  ;;  %v1639_v23 = vld [vmem:[%s2728_s1 + $0x60] sm:$0xff]  ;;  %v2571_v11 = vsub.s32 2, %v685_v3  ;;  %vm1521_vm10 = vcmask 516096  }
  0x62   : > { %v2008_v22 = vpack.c.bf16 %v444_v20, %v443_v19  ;;  %v1640_v24 = vld [vmem:[%s2728_s1 + $0x68] sm:$0xff]  ;;  %v1642_v29 = vld [vmem:[%s2728_s1 + $0x78] sm:$0xff]  ;;  %v1643_v31 = vld [vmem:[%s2728_s1 + $0x80] sm:$0xff]  ;;  %1255 = vst.msk [vmem:[#allocation5] sm:$0xff] %vm702_vm2, %v2284_v2 }
  0x63   : > { %1997 = vmatpush3.bf16.msra.mxu0 %v1996_v13  ;;  %v2011_v25 = vpack.c.bf16 %v1640_v24, %v1639_v23  ;;  %v2014_v30 = vpack.c.bf16 %v1642_v29, %v1641_v26  ;;  %v1644_v32 = vld [vmem:[%s2728_s1 + $0x88] sm:$0xff]  ;;  %v721_v35 = vld [vmem:[#allocation7 + $0x40] sm:$0xff]  ;;  %v724_v42 = vld [vmem:[#allocation7 + $0x58] sm:$0xff]  ;;  %981 = vst.msk [vmem:[#allocation4 + $0x8] sm:$0x3f] %vm980_vm4, %v2284_v2 }
  0x64   : > { %2006 = vmatpush3.bf16.msra.mxu1 %v2005_v15  ;;  %1998 = vmatprep.subr.bf16.mxu0 %v2282_v1  ;;  %v2017_v33 = vpack.c.bf16 %v1644_v32, %v1643_v31  ;;  %v722_v36 = vld [vmem:[#allocation7 + $0x48] sm:$0xff]  ;;  %v710_v38 = vld [vmem:[#allocation7] sm:$0xff]  ;;  %v723_v41 = vld [vmem:[#allocation7 + $0x50] sm:$0xff]  ;;  %1256 = vst.msk [vmem:[#allocation5 + $0x8] sm:$0xf] %vm982_vm5, %v2284_v2 }
  0x65   : > { %2007 = vmatprep.subr.bf16.mxu1 %v2282_v1  ;;  %v2020_v37 = vpack.c.bf16 %v722_v36, %v721_v35  ;;  %v711_v39 = vld [vmem:[#allocation7 + $0x8] sm:$0xff]  ;;  %v2023_v43 = vpack.c.bf16 %v724_v42, %v723_v41  ;;  %v712_v44 = vld [vmem:[#allocation7 + $0x10] sm:$0xff]  ;;  %v713_v45 = vld [vmem:[#allocation7 + $0x18] sm:$0xff] }
  0x66   : > { %v2032_v40 = vpack.c.bf16 %v711_v39, %v710_v38  ;;  %v2035_v46 = vpack.c.bf16 %v713_v45, %v712_v44  ;;  %v725_v47 = vld [vmem:[#allocation7 + $0x60] sm:$0xff]  ;;  %v726_v48 = vld [vmem:[#allocation7 + $0x68] sm:$0xff]  ;;  %v727_v53 = vld [vmem:[#allocation7 + $0x70] sm:$0xff] }
  0x67   : > { %2000 = vmatpush3.bf16.msra.mxu0 %v1999_v21  ;;  %v2026_v49 = vpack.c.bf16 %v726_v48, %v725_v47  ;;  %v714_v50 = vld [vmem:[#allocation7 + $0x20] sm:$0xff]  ;;  %v715_v51 = vld [vmem:[#allocation7 + $0x28] sm:$0xff]  ;;  %v728_v54 = vld [vmem:[#allocation7 + $0x78] sm:$0xff] }
  0x68   : > { %2009 = vmatpush3.bf16.msra.mxu1 %v2008_v22  ;;  %v446_v27 = vld [vmem:[#allocation2 + $0x8] ss:$2 sm:$0xff]  ;;  %2010 = vmatprep.subr.bf16.mxu0 %v2282_v1  ;;  %v438_v28 = vld [vmem:[#allocation2 + $0x7] ss:$2 sm:$0xff]  ;;  %v2038_v52 = vpack.c.bf16 %v715_v51, %v714_v50  ;;  %v2029_v56 = vpack.c.bf16 %v728_v54, %v727_v53  ;;  %v683_v5 = vld [vmem:[#allocation11] sm:$0x7] }
  0x69   : > { %2019 = vmatprep.subr.bf16.mxu1 %v2282_v1  ;;  %v601_v34 = vld [vmem:[#allocation2 + $0x9] ss:$2 sm:$0xff]  ;;  %v687_v6 = vrot.slane %v683_v5, %v2566_v4  ;;  %v695_v13 = vrot.slane %v683_v5, %v2569_v8  ;;  %v700_v15 = vrot.slane %v683_v5, %v2571_v11  ;;  %v878_v19 = vld [vmem:[#allocation7 + $0x80] sm:$0xff]  ;;  %v879_v20 = vld [vmem:[#allocation7 + $0x88] sm:$0xff] }
  0x6a   : > { %1789 = vmatmul.mubr.msk.f32.vlgmr.msra.gmra.mrb[0].mxu0 %vm427_vm0, %v446_v27  ;;  %v716_v55 = vld [vmem:[#allocation7 + $0x30] sm:$0xff]  ;;  %v717_v57 = vld [vmem:[#allocation7 + $0x38] sm:$0xff]  ;;  %v2044_v21 = vpack.c.bf16 %v879_v20, %v878_v19  ;;  %v882_v27 = vld [vmem:[#allocation7 + $0xa0] sm:$0xff] }
  0x6b   : > { %1804 = vmatmul.mubr.msk.f32.vlgmr.msra.gmra.mrb[0].mxu1 %vm427_vm0, %v438_v28  ;;  %2012 = vmatpush3.bf16.msra.mxu0 %v2011_v25  ;;  %v2041_v58 = vpack.c.bf16 %v717_v57, %v716_v55  ;;  %v880_v22 = vld [vmem:[#allocation7 + $0x90] sm:$0xff]  ;;  %v881_v23 = vld [vmem:[#allocation7 + $0x98] sm:$0xff]  ;;  %v883_v28 = vld [vmem:[#allocation7 + $0xa8] sm:$0xff] }
  0x6c   : > { %2013 = vmatprep.subr.bf16.mxu0 %v2282_v1  ;;  %1818 = vmatprep.mubr.msk.f32.mxu0 %vm2283_vm1, %v2284_v2  ;;  %v2047_v26 = vpack.c.bf16 %v881_v23, %v880_v22  ;;  %v2050_v29 = vpack.c.bf16 %v883_v28, %v882_v27  ;;  %v885_v31 = vld [vmem:[#allocation7 + $0xb8] sm:$0xff]  ;;  %v998_v35 = vld [vmem:[#allocation9 + $0x48] sm:$0xff]  ;;  %v992_v54 = vld [vmem:[#allocation9 + $0x30] sm:$0xff] }
  0x6d   : > { %1837 = vmatprep.mubr.msk.f32.mxu1 %vm2283_vm1, %v2284_v2  ;;  %2021 = vmatpush3.bf16.msra.mxu1 %v2020_v37  ;;  %v986_v37 = vld [vmem:[#allocation9] sm:$0xff]  ;;  %v987_v38 = vld [vmem:[#allocation9 + $0x8] sm:$0xff]  ;;  %v1000_v41 = vld [vmem:[#allocation9 + $0x58] sm:$0xff] }
  0x6e   : > { %2022 = vmatprep.subr.bf16.mxu1 %v2282_v1  ;;  %v2068_v39 = vpack.c.bf16 %v987_v38, %v986_v37  ;;  %v989_v44 = vld [vmem:[#allocation9 + $0x18] sm:$0xff]  ;;  %v1002_v47 = vld [vmem:[#allocation9 + $0x68] sm:$0xff]  ;;  %v1156_v19 = vld [vmem:[#allocation9 + $0x90] sm:$0xff] }
  0x6f   : > { %2015 = vmatpush3.bf16.msra.mxu0 %v2014_v30  ;;  %v884_v30 = vld [vmem:[#allocation7 + $0xb0] sm:$0xff]  ;;  %v991_v50 = vld [vmem:[#allocation9 + $0x28] sm:$0xff]  ;;  %v1004_v53 = vld [vmem:[#allocation9 + $0x78] sm:$0xff] }
  0x70   : > { %2016 = vmatprep.subr.bf16.mxu0 %v2282_v1  ;;  %v2053_v32 = vpack.c.bf16 %v885_v31, %v884_v30  ;;  %v1157_v20 = vld [vmem:[#allocation9 + $0x98] sm:$0xff]  ;;  %v1160_v27 = vld [vmem:[#allocation9 + $0xb0] sm:$0xff]  ;;  %v1652_v31 = vld [vmem:[%s2731_s4 + $0x40] sm:$0xff] }
  0x71   : > { %2024 = vmatpush3.bf16.msra.mxu1 %v2023_v43  ;;  %v988_v43 = vld [vmem:[#allocation9 + $0x10] sm:$0xff]  ;;  %v2083_v23 = vpack.c.bf16 %v1157_v20, %v1156_v19  ;;  %v1161_v28 = vld [vmem:[#allocation9 + $0xb8] sm:$0xff] }
  0x72   : > { %2025 = vmatprep.subr.bf16.mxu1 %v2282_v1  ;;  %v2071_v45 = vpack.c.bf16 %v989_v44, %v988_v43  ;;  %v1654_v37 = vld [vmem:[%s2731_s4 + $0x50] sm:$0xff]  ;;  %v1655_v38 = vld [vmem:[%s2731_s4 + $0x58] sm:$0xff]  ;;  %v1656_v43 = vld [vmem:[%s2731_s4 + $0x60] sm:$0xff] }
  0x73   : > { %2018 = vmatpush3.bf16.msra.mxu0 %v2017_v33  ;;  %v1657_v44 = vld [vmem:[%s2731_s4 + $0x68] sm:$0xff] }
  0x74   : > { %2031 = vmatprep.subr.bf16.mxu0 %v2282_v1  ;;  %v1667_v19 = vld [vmem:[%s2731_s4 + $0xa8] sm:$0xff] }
  0x75   : > { %2027 = vmatpush3.bf16.msra.mxu1 %v2026_v49  ;;  %v990_v49 = vld [vmem:[#allocation9 + $0x20] sm:$0xff] }
  0x76   : > { %1819 = vmatmul.mubr.msk.f32.vlgmr.msra.gmra.mrb[2].mxu0 %vm427_vm0, %v601_v34  ;;  %2028 = vmatprep.subr.bf16.mxu1 %v2282_v1  ;;  %v997_v34 = vld [vmem:[#allocation9 + $0x40] sm:$0xff]  ;;  %v2074_v51 = vpack.c.bf16 %v991_v50, %v990_v49  ;;  %v1658_v49 = vld [vmem:[%s2731_s4 + $0x70] sm:$0xff] }
  0x77   : > { %1856 = vmatprep.mubr.msk.f32.mxu0 %vm2283_vm1, %v2284_v2  ;;  %2033 = vmatpush3.bf16.msra.mxu0 %v2032_v40  ;;  %v2056_v36 = vpack.c.bf16 %v998_v35, %v997_v34  ;;  %v999_v40 = vld [vmem:[#allocation9 + $0x50] sm:$0xff]  ;;  %v1259_v34 = vld [vmem:[%s2731_s4] sm:$0xff]  ;;  %v1659_v50 = vld [vmem:[%s2731_s4 + $0x78] sm:$0xff] }
  0x78   : > { %2034 = vmatprep.subr.bf16.mxu0 %v2282_v1  ;;  %v2059_v42 = vpack.c.bf16 %v1000_v41, %v999_v40  ;;  %v1260_v35 = vld [vmem:[%s2731_s4 + $0x8] sm:$0xff]  ;;  %v1261_v40 = vld [vmem:[%s2731_s4 + $0x10] sm:$0xff]  ;;  %v1262_v41 = vld [vmem:[%s2731_s4 + $0x18] sm:$0xff] }
  0x79   : > { %2030 = vmatpush3.bf16.msra.mxu1 %v2029_v56  ;;  %v993_v56 = vld [vmem:[#allocation9 + $0x38] sm:$0xff] }
  0x7a   : > { %2043 = vmatprep.subr.bf16.mxu1 %v2282_v1  ;;  %v2077_v57 = vpack.c.bf16 %v993_v56, %v992_v54 }
  0x7b   : > { %2036 = vmatpush3.bf16.msra.mxu0 %v2035_v46  ;;  %v1001_v46 = vld [vmem:[#allocation9 + $0x60] sm:$0xff] }
  0x7c   : > { %2037 = vmatprep.subr.bf16.mxu0 %v2282_v1  ;;  %v2062_v48 = vpack.c.bf16 %v1002_v47, %v1001_v46  ;;  %v1263_v46 = vld [vmem:[%s2731_s4 + $0x20] sm:$0xff]  ;;  %v1264_v47 = vld [vmem:[%s2731_s4 + $0x28] sm:$0xff] }
  0x7f   : > { %2039 = vmatpush3.bf16.msra.mxu0 %v2038_v52  ;;  %v1003_v52 = vld [vmem:[#allocation9 + $0x70] sm:$0xff] }
  0x80   : > { %2040 = vmatprep.subr.bf16.mxu0 %v2282_v1  ;;  %v2065_v55 = vpack.c.bf16 %v1004_v53, %v1003_v52  ;;  %v2101_v52 = vpack.c.bf16 %v1659_v50, %v1658_v49  ;;  %v1266_v53 = vld [vmem:[%s2731_s4 + $0x38] sm:$0xff] }
  0x83   : > { %2042 = vmatpush3.bf16.msra.mxu0 %v2041_v58 }
  0x84   : > { %2055 = vmatprep.subr.bf16.mxu0 %v2282_v1 }
 0x13d   : > { %v523_v60 = vpop.f32.mrb[0].mxu0 }
 0x13e   : > { %v1790_v61 = vpop.f32.mrb[1].mxu0  ;;  %v596_v62 = vpop.f32.mrb[0].mxu1 }
 0x13f   : > { %v597_v63 = vadd.f32 %v596_v62, %v523_v60  ;;  %v1805_v0 = vpop.f32.mrb[1].mxu1 }
 0x149   : > { %v678_v7 = vpop.f32.mrb[2].mxu0 }
 0x14a   : > { %v682_v9 = vadd.f32 %v678_v7, %v597_v63  ;;  %v1820_v10 = vpop.f32.mrb[3].mxu0  ;;  %v960_v63 = vld [vmem:[%s2733_s6] sm:$0x7] }
 0x14b   : > { %v964_v0 = vrot.slane %v960_v63, %v2566_v4 }
 0x14c   : > { %v688_v12 = vadd.f32 %v687_v6, %v682_v9  ;;  %v972_v9 = vrot.slane %v960_v63, %v2569_v8 }
 0x14e   : > { %vm689_vm3 = vcmp.ge.f32.partialorder %v688_v12, 0.0  ;;  %v690_v14 = vmul.f32 0.2, %v688_v12 }
 0x150   : > { %v691_v16 = vsel %vm689_vm3, %v688_v12, %v690_v14  ;;  %v977_v12 = vrot.slane %v960_v63, %v2571_v11 }
 0x151   : > { %v696_v17 = vmul.f32 %v695_v13, %v691_v16  ;;  %v1154_v16 = vld [vmem:[#allocation9 + $0x80] sm:$0xff] }
 0x153   : > { %v701_v18 = vadd.f32 %v700_v15, %v696_v17  ;;  %v1155_v17 = vld [vmem:[#allocation9 + $0x88] sm:$0xff] }
 0x155   : > { %707 = vst.msk [vmem:[#allocation3 + $0x8] sm:$0xff] %vm702_vm2, %v701_v18  ;;  %v2080_v18 = vpack.c.bf16 %v1155_v17, %v1154_v16 }
 0x15c   : > { %v719_v24 = vld [vmem:[#allocation3 + $0x8] ss:$2 sm:$0xf]  ;;  %v709_v25 = vld [vmem:[#allocation3 + $0x7] ss:$2 sm:$0xf] }
 0x15d   : > { %1838 = vmatmul.mubr.msk.f32.vlgmr.msra.gmra.mrb[2].mxu1 %vm702_vm2, %v719_v24  ;;  %1857 = vmatmul.mubr.msk.f32.vlgmr.msra.gmra.mrb[4].mxu0 %vm702_vm2, %v709_v25  ;;  %v876_v33 = vld [vmem:[#allocation3 + $0x9] ss:$2 sm:$0xf]  ;;  %v1158_v24 = vld [vmem:[#allocation9 + $0xa0] sm:$0xff]  ;;  %v1159_v25 = vld [vmem:[#allocation9 + $0xa8] sm:$0xff] }
 0x15e   : > { %2045 = vmatpush3.bf16.msra.mxu1 %v2044_v21  ;;  %1875 = vmatprep.mubr.msk.f32.mxu1 %vm2283_vm1, %v2284_v2 }
 0x15f   : > { %2046 = vmatprep.subr.bf16.mxu1 %v2282_v1  ;;  %1894 = vmatprep.mubr.msk.f32.mxu0 %vm2283_vm1, %v2284_v2 }
 0x160   : > { %2057 = vmatpush3.bf16.msra.mxu0 %v2056_v36  ;;  %v2104_v36 = vpack.c.bf16 %v1260_v35, %v1259_v34 }
 0x161   : > { %2058 = vmatprep.subr.bf16.mxu0 %v2282_v1 }
 0x162   : > { %2048 = vmatpush3.bf16.msra.mxu1 %v2047_v26  ;;  %v2086_v26 = vpack.c.bf16 %v1159_v25, %v1158_v24 }
 0x163   : > { %2049 = vmatprep.subr.bf16.mxu1 %v2282_v1 }
 0x164   : > { %2060 = vmatpush3.bf16.msra.mxu0 %v2059_v42  ;;  %v2107_v42 = vpack.c.bf16 %v1262_v41, %v1261_v40 }
 0x165   : > { %2061 = vmatprep.subr.bf16.mxu0 %v2282_v1 }
 0x166   : > { %2051 = vmatpush3.bf16.msra.mxu1 %v2050_v29  ;;  %v2089_v29 = vpack.c.bf16 %v1161_v28, %v1160_v27 }
 0x167   : > { %2052 = vmatprep.subr.bf16.mxu1 %v2282_v1 }
 0x168   : > { %2063 = vmatpush3.bf16.msra.mxu0 %v2062_v48  ;;  %v2110_v48 = vpack.c.bf16 %v1264_v47, %v1263_v46 }
 0x169   : > { %2064 = vmatprep.subr.bf16.mxu0 %v2282_v1 }
 0x16a   : > { %2054 = vmatpush3.bf16.msra.mxu1 %v2053_v32  ;;  %v1653_v32 = vld [vmem:[%s2731_s4 + $0x48] sm:$0xff] }
 0x16b   : > { %2067 = vmatprep.subr.bf16.mxu1 %v2282_v1 }
 0x16c   : > { %2066 = vmatpush3.bf16.msra.mxu0 %v2065_v55  ;;  %v1258_v55 = vld [vmem:[#allocation5 + $0x7] sm:$0x1] }
 0x16d   : > { %1876 = vmatmul.mubr.msk.f32.vlgmr.msra.gmra.mrb[4].mxu1 %vm702_vm2, %v876_v33  ;;  %2079 = vmatprep.subr.bf16.mxu0 %v2282_v1  ;;  %v2092_v33 = vpack.c.bf16 %v1653_v32, %v1652_v31 }
 0x16e   : > { %1913 = vmatprep.mubr.msk.f32.mxu1 %vm2283_vm1, %v2284_v2  ;;  %2069 = vmatpush3.bf16.msra.mxu1 %v2068_v39  ;;  %v2095_v39 = vpack.c.bf16 %v1655_v38, %v1654_v37  ;;  %v1519_v38 = vld [vmem:[%s2736_s9] sm:$0x1] }
 0x16f   : > { %2070 = vmatprep.subr.bf16.mxu1 %v2282_v1 }
 0x172   : > { %2072 = vmatpush3.bf16.msra.mxu1 %v2071_v45  ;;  %v2098_v45 = vpack.c.bf16 %v1657_v44, %v1656_v43  ;;  %v1526_v43 = vld [vmem:[#allocation6] sm:$0x1] }
 0x173   : > { %2073 = vmatprep.subr.bf16.mxu1 %v2282_v1 }
 0x176   : > { %2075 = vmatpush3.bf16.msra.mxu1 %v2074_v51  ;;  %v1265_v51 = vld [vmem:[%s2731_s4 + $0x30] sm:$0xff] }
 0x177   : > { %2076 = vmatprep.subr.bf16.mxu1 %v2282_v1  ;;  %v2113_v54 = vpack.c.bf16 %v1266_v53, %v1265_v51 }
 0x17a   : > { %2078 = vmatpush3.bf16.msra.mxu1 %v2077_v57 }
 0x17b   : > { %2091 = vmatprep.subr.bf16.mxu1 %v2282_v1 }
 0x230   : > { %v798_v58 = vpop.f32.mrb[2].mxu1  ;;  %v871_v59 = vpop.f32.mrb[4].mxu0 }
 0x231   : > { %v872_v60 = vadd.f32 %v871_v59, %v798_v58  ;;  %v1839_v61 = vpop.f32.mrb[3].mxu1  ;;  %v1858_v62 = vpop.f32.mrb[5].mxu0 }
 0x232   : > { %v1236_v61 = vld [vmem:[%s2734_s7] sm:$0x7] }
 0x233   : > { %v1240_v62 = vrot.slane %v1236_v61, %v2566_v4  ;;  %v1663_v4 = vld [vmem:[%s2731_s4 + $0x88] sm:$0xff] }
 0x240   : > { %v955_v3 = vpop.f32.mrb[4].mxu1 }
 0x241   : > { %v959_v5 = vadd.f32 %v955_v3, %v872_v60  ;;  %v1877_v6 = vpop.f32.mrb[5].mxu1 }
 0x242   : > { %v1248_v6 = vrot.slane %v1236_v61, %v2569_v8  ;;  %v1664_v8 = vld [vmem:[%s2731_s4 + $0x90] sm:$0xff] }
 0x243   : > { %v965_v7 = vadd.f32 %v964_v0, %v959_v5 }
 0x245   : > { %vm966_vm6 = vcmp.ge.f32.partialorder %v965_v7, 0.0  ;;  %v967_v10 = vmul.f32 0.2, %v965_v7 }
 0x247   : > { %v968_v13 = vsel %vm966_vm6, %v965_v7, %v967_v10 }
 0x248   : > { %v973_v14 = vmul.f32 %v972_v9, %v968_v13  ;;  %v1253_v9 = vrot.slane %v1236_v61, %v2571_v11  ;;  %v1665_v11 = vld [vmem:[%s2731_s4 + $0x98] sm:$0xff] }
 0x249   : > { %v2119_v17 = vpack.c.bf16 %v1665_v11, %v1664_v8 }
 0x24a   : > { %v978_v15 = vadd.f32 %v977_v12, %v973_v14  ;;  %v1662_v14 = vld [vmem:[%s2731_s4 + $0x80] sm:$0xff] }
 0x24c   : > { %983 = vst.msk [vmem:[#allocation4 + $0x8] sm:$0xf] %vm982_vm5, %v978_v15  ;;  %v2116_v15 = vpack.c.bf16 %v1663_v4, %v1662_v14 }
 0x253   : > { %v995_v21 = vld [vmem:[#allocation4 + $0x8] ss:$2 sm:$0x3]  ;;  %v985_v22 = vld [vmem:[#allocation4 + $0x7] ss:$2 sm:$0x3] }
 0x254   : > { %1895 = vmatmul.mubr.msk.f32.vlgmr.msra.gmra.mrb[6].mxu0 %vm702_vm2, %v995_v21  ;;  %1914 = vmatmul.mubr.msk.f32.vlgmr.msra.gmra.mrb[6].mxu1 %vm702_vm2, %v985_v22  ;;  %v1152_v30 = vld [vmem:[#allocation4 + $0x9] ss:$2 sm:$0x3]  ;;  %v1668_v21 = vld [vmem:[%s2731_s4 + $0xb0] sm:$0xff] }
 0x255   : > { %2081 = vmatpush3.bf16.msra.mxu0 %v2080_v18  ;;  %1932 = vmatprep.mubr.msk.f32.mxu0 %vm2283_vm1, %v2284_v2  ;;  %v1666_v18 = vld [vmem:[%s2731_s4 + $0xa0] sm:$0xff] }
 0x256   : > { %2082 = vmatprep.subr.bf16.mxu0 %v2282_v1  ;;  %1951 = vmatprep.mubr.msk.f32.mxu1 %vm2283_vm1, %v2284_v2  ;;  %v2122_v20 = vpack.c.bf16 %v1667_v19, %v1666_v18 }
 0x257   : > { %2093 = vmatpush3.bf16.msra.mxu1 %v2092_v33 }
 0x258   : > { %2094 = vmatprep.subr.bf16.mxu1 %v2282_v1 }
 0x259   : > { %2084 = vmatpush3.bf16.msra.mxu0 %v2083_v23 }
 0x25a   : > { %2085 = vmatprep.subr.bf16.mxu0 %v2282_v1 }
 0x25b   : > { %2096 = vmatpush3.bf16.msra.mxu1 %v2095_v39 }
 0x25c   : > { %2097 = vmatprep.subr.bf16.mxu1 %v2282_v1 }
 0x25d   : > { %2087 = vmatpush3.bf16.msra.mxu0 %v2086_v26 }
 0x25e   : > { %2088 = vmatprep.subr.bf16.mxu0 %v2282_v1 }
 0x25f   : > { %2099 = vmatpush3.bf16.msra.mxu1 %v2098_v45 }
 0x260   : > { %2100 = vmatprep.subr.bf16.mxu1 %v2282_v1 }
 0x261   : > { %2090 = vmatpush3.bf16.msra.mxu0 %v2089_v29 }
 0x262   : > { %2103 = vmatprep.subr.bf16.mxu0 %v2282_v1 }
 0x263   : > { %2102 = vmatpush3.bf16.msra.mxu1 %v2101_v52 }
 0x264   : > { %1933 = vmatmul.mubr.msk.f32.vlgmr.msra.gmra.mrb[8].mxu0 %vm702_vm2, %v1152_v30  ;;  %2115 = vmatprep.subr.bf16.mxu1 %v2282_v1  ;;  %v1507_v30 = vld [vmem:[%s2735_s8] sm:$0x7] }
 0x265   : > { %1970 = vmatprep.mubr.msk.f32.mxu0 %vm2283_vm1, %v2284_v2  ;;  %2105 = vmatpush3.bf16.msra.mxu0 %v2104_v36  ;;  %v1513_v34 = vrot.slane %v1507_v30, 1  ;;  %v1516_v35 = vrot.slane %v1507_v30, 2 }
 0x266   : > { %2106 = vmatprep.subr.bf16.mxu0 %v2282_v1 }
 0x269   : > { %2108 = vmatpush3.bf16.msra.mxu0 %v2107_v42  ;;  %v2285_v42 = vmov 0  }
 0x26a   : > { %2109 = vmatprep.subr.bf16.mxu0 %v2282_v1  ;;  %2172 = vset.pattern.permute.xlu0 %v2285_v42 }
 0x26d   : > { %2111 = vmatpush3.bf16.msra.mxu0 %v2110_v48 }
 0x26e   : > { %2112 = vmatprep.subr.bf16.mxu0 %v2282_v1 }
 0x271   : > { %2114 = vmatpush3.bf16.msra.mxu0 %v2113_v54 }
 0x274   : > { %1971 = vmatmul.mubr.msk.f32.vlgmr.msra.gmra.mrb[10].mxu0 %vm702_vm2, %v1258_v55 }
 0x327   : > { %v1074_v56 = vpop.f32.mrb[6].mxu0  ;;  %v1147_v57 = vpop.f32.mrb[6].mxu1 }
 0x328   : > { %v1148_v58 = vadd.f32 %v1147_v57, %v1074_v56  ;;  %v1896_v59 = vpop.f32.mrb[7].mxu0  ;;  %v1915_v60 = vpop.f32.mrb[7].mxu1 }
 0x337   : > { %v1231_v63 = vpop.f32.mrb[8].mxu0 }
 0x338   : > { %v1235_v0 = vadd.f32 %v1231_v63, %v1148_v58  ;;  %v1934_v3 = vpop.f32.mrb[9].mxu0 }
 0x33a   : > { %v1241_v5 = vadd.f32 %v1240_v62, %v1235_v0 }
 0x33c   : > { %vm1242_vm8 = vcmp.ge.f32.partialorder %v1241_v5, 0.0  ;;  %v1243_v7 = vmul.f32 0.2, %v1241_v5 }
 0x33e   : > { %v1244_v10 = vsel %vm1242_vm8, %v1241_v5, %v1243_v7 }
 0x33f   : > { %v1249_v12 = vmul.f32 %v1248_v6, %v1244_v10 }
 0x341   : > { %v1254_v13 = vadd.f32 %v1253_v9, %v1249_v12 }
 0x343   : > { %1257 = vst.msk [vmem:[#allocation5 + $0x8] sm:$0x3] %vm705_vm7, %v1254_v13 }
 0x347   : > { %v1419_v24 = vpop.f32.mrb[10].mxu0 }
 0x348   : > { %v1972_v25 = vpop.f32.mrb[11].mxu0 }
 0x34a   : > { %v1267_v16 = vld [vmem:[#allocation5 + $0x8] sm:$0x1]  ;;  %v1423_v23 = vld [vmem:[#allocation5 + $0x9] sm:$0x1] }
 0x34b   : > { %1952 = vmatmul.mubr.msk.f32.vlgmr.msra.gmra.mrb[8].mxu1 %vm702_vm2, %v1267_v16 }
 0x34c   : > { %2117 = vmatpush3.bf16.msra.mxu1 %v2116_v15  ;;  %1989 = vmatprep.mubr.msk.f32.mxu1 %vm2283_vm1, %v2284_v2  ;;  %v1669_v2 = vld [vmem:[%s2731_s4 + $0xb8] sm:$0xff] }
 0x34d   : > { %2118 = vmatprep.subr.bf16.mxu1 %v2282_v1  ;;  %v2125_v22 = vpack.c.bf16 %v1669_v2, %v1668_v21 }
 0x350   : > { %2120 = vmatpush3.bf16.msra.mxu1 %v2119_v17 }
 0x351   : > { %2121 = vmatprep.subr.bf16.mxu1 %v2282_v1 }
 0x354   : > { %2123 = vmatpush3.bf16.msra.mxu1 %v2122_v20 }
 0x355   : > { %2124 = vmatprep.subr.bf16.mxu1 %v2282_v1 }
 0x358   : > { %2126 = vmatpush3.bf16.msra.mxu1 %v2125_v22 }
 0x35b   : > { %1990 = vmatmul.mubr.msk.f32.vlgmr.msra.gmra.mrb[10].mxu1 %vm702_vm2, %v1423_v23 }
 0x41e   : > { %v1346_v26 = vpop.f32.mrb[8].mxu1 }
 0x41f   : > { %v1420_v27 = vadd.f32 %v1419_v24, %v1346_v26  ;;  %v1953_v28 = vpop.f32.mrb[9].mxu1 }
 0x42e   : > { %v1502_v29 = vpop.f32.mrb[10].mxu1 }
 0x42f   : > { %v1506_v31 = vadd.f32 %v1502_v29, %v1420_v27  ;;  %v1991_v32 = vpop.f32.mrb[11].mxu1 }
 0x431   : > { %v1508_v33 = vadd.f32 %v1507_v30, %v1506_v31 }
 0x433   : > { %vm1509_vm9 = vcmp.ge.f32.partialorder %v1508_v33, 0.0  ;;  %v1510_v1 = vmul.f32 0.2, %v1508_v33 }
 0x435   : > { %v1511_v36 = vsel %vm1509_vm9, %v1508_v33, %v1510_v1 }
 0x436   : > { %v1515_v37 = vmul.f32 %v1513_v34, %v1511_v36 }
 0x438   : > { %v1518_v39 = vadd.f32 %v1516_v35, %v1515_v37 }
 0x43a   : > { %v1520_v40 = vmul.f32 %v1519_v38, %v1518_v39 }
 0x43c   : > { %v1522_v41 = vsel %vm1521_vm10, %v1520_v40, 0.0 }
 0x43d   : > { %1523 = vadd.xlane.f32.xlu0 %v1522_v41 }
 0x4ca   : > { %v1524_v44 = vpop.xlane.xlu0 %1523 }
 0x4cb   : > { %v1527_v45 = vadd.f32 %v1526_v43, %v1524_v44 }
 0x4cd   : > { %v1528_v46 = vsub.f32 0.0, %v1527_v45 }
 0x4cf   : > { %v1529_v47 = vmul.f32 1.442695, %v1528_v46 }
 0x4d1   : > { %2173 = vpow2.f32 %v1529_v47 }
 0x4db   : > { %v2174_v48 = vpop.eup %2173 }
 0x4dc   : > { %v1531_v49 = vadd.f32 1.0, %v2174_v48 }
 0x4de   : > { %2175 = vrcp.f32 %v1531_v49 }
 0x4e8   : > { %v2176_v50 = vpop.eup %2175 }
 0x4e9   : > { %1536 = vperm.xlu0 %2172, %v2176_v50  }
 0x568   : > { %v1537_v51 = vpop.permute.xlu0 %1536 }
 0x569   : > { %1539 = vst [vmem:[%s426_s26] sm:$0x1] %v1537_v51 }
 0x56a PF: > { %s25_s19 = sadd.s32 1, %s2275_s19  }
 0x56b   : > { %p22_p9 = scmp.ge.s32.totalorder %s25_s19, 4  }
 0x56d   :  { %24 = sbr.rel (!%p22_p9) target bundleno = 5 (0x5), region = 124 }
 0x574   :  { %1557 = vsyncpa [#allocation8], 1 }
 0x575   :  { %1559 = vsyncpa [#allocation8 + $0x1], 1 }
 0x576   :  { %1560 = vsyncpa [#allocation10], 1 }

</bundles_post_ra>
